<compile_context>
chip_gen: v7x
topology: tpu7x:2x2x1
jax: 0.10.0
libtpu: 0.0.40
codegen_flags: <defaults>
</compile_context>

<pallas_src>
import functools
import math

import jax
import jax.numpy as jnp
from jax import lax
from jax.experimental import pallas as pl
from jax.experimental.pallas import tpu as pltpu

LANES = 128
MAX_TILE_ROWS = 2048                    # 2048 x 128 x 4 B = 1 MiB per f32 tile
VMEM_LIMIT_BYTES = 32 * 1024 * 1024     # safe on v5e/v6e/v7x, > v5e 16 MiB default


def _round_up(x, m):
    return -(-x // m) * m


def _sublane_multiple(dtype):
    """Row-count multiple so blocks respect native sublane packing."""
    itemsize = jnp.dtype(dtype).itemsize
    return 8 * max(1, 4 // itemsize)    # f32 -> 8, bf16 -> 16, int8/fp8 -> 32


# ------------------------------ kernels ------------------------------------


def _l1_sum_kernel(*refs, scale, rows, tile_rows, steps_per_core, needs_mask,
                   has_weight):
    """Per-step: acc(1,128) += sublane-reduced masked |p - t| [* w].

    Epilogue (last step of this core): cross-lane reduce, scale, store.
    """
    if has_weight:
        p_ref, t_ref, w_ref, o_ref, acc_ref = refs
    else:
        p_ref, t_ref, o_ref, acc_ref = refs

    i = pl.program_id(1)

    @pl.when(i == 0)
    def _():
        acc_ref[...] = jnp.zeros_like(acc_ref)

    vals = jnp.abs(p_ref[...].astype(jnp.float32)
                   - t_ref[...].astype(jnp.float32))
    if has_weight:
        vals = vals * w_ref[...].astype(jnp.float32)

    if needs_mask:  # static python branch: only emitted for ragged grids
        c = pl.program_id(0)
        g = c * steps_per_core + i          # global tile index for this step
        valid = rows - g * tile_rows        # <=0 for overhang, <tile_rows at tail
        row_ids = lax.broadcasted_iota(jnp.int32, vals.shape, 0)
        vals = jnp.where(row_ids < valid, vals, 0.0)

    acc_ref[...] += jnp.sum(vals, axis=0, keepdims=True)

    @pl.when(i == pl.num_programs(1) - 1)
    def _():
        partial = jnp.sum(acc_ref[...]) * scale
        o_ref[...] = jnp.broadcast_to(partial, o_ref.shape).astype(o_ref.dtype)


def _l1_none_kernel(*refs, scale, has_weight):
    """Elementwise loss_weight * |p - t| [* w]; out-of-bounds rows of a partial
    last block are dropped by the Pallas writeback, so no masking needed."""
    if has_weight:
        p_ref, t_ref, w_ref, o_ref = refs
    else:
        p_ref, t_ref, o_ref = refs
    r = jnp.abs(p_ref[...].astype(jnp.float32)
                - t_ref[...].astype(jnp.float32))
    if has_weight:
        r = r * w_ref[...].astype(jnp.float32)
    if scale != 1.0:  # static python branch
        r = r * scale
    o_ref[...] = r.astype(o_ref.dtype)


# ------------------------------ wrapper -------------------------------------


@functools.partial(jax.jit, static_argnames=("reduction", "loss_weight",
                                              "has_weight"))
def _l1_loss_impl(pred, target, weight, *, reduction, loss_weight, has_weight):
    orig_shape = pred.shape
    orig_dtype = pred.dtype
    numel = math.prod(orig_shape) if orig_shape else 1

    flats = [pred.reshape(-1), target.reshape(-1)]
    if has_weight:
        flats.append(weight.reshape(-1))

    # Row-major reshape to a lane-aligned (rows, 128) slab is free when numel
    # is a multiple of 128 (the common case for NCHW image tensors).  Only for
    # awkward sizes we pay a single zero-pad pass up to the next lane multiple
    # (zero padding contributes 0 to sum/mean, even in the weighted case).
    needs_pad = numel % LANES != 0
    padded = _round_up(numel, LANES)
    rows = padded // LANES
    if needs_pad:
        flats = [jnp.pad(f, (0, padded - numel)) for f in flats]
    slabs = [f.reshape(rows, LANES) for f in flats]

    mult = _sublane_multiple(orig_dtype)
    tile_rows = min(MAX_TILE_ROWS, _round_up(rows, mult))
    n_tiles = -(-rows // tile_rows)

    if reduction == "none":
        kernel = functools.partial(_l1_none_kernel, scale=float(loss_weight),
                                   has_weight=has_weight)
        spec = pl.BlockSpec((tile_rows, LANES), lambda i: (i, 0))
        out = pl.pallas_call(
            kernel,
            out_shape=jax.ShapeDtypeStruct((rows, LANES), orig_dtype),
            grid_spec=pltpu.PrefetchScalarGridSpec(
                num_scalar_prefetch=0,
                grid=(n_tiles,),
                in_specs=[spec] * len(slabs),
                out_specs=spec,
            ),
            compiler_params=pltpu.CompilerParams(
                dimension_semantics=("parallel",),
                vmem_limit_bytes=VMEM_LIMIT_BYTES),
        )(*slabs)
        if needs_pad:
            out = out.reshape(-1)[:numel]
        return out.reshape(orig_shape)

    # 'mean' or 'sum': streaming reduction with a resident (1,128) accumulator.
    scale = float(loss_weight) / (numel if reduction == "mean" else 1)

    # 2-core split whenever there are >= 2 tiles (v7x megacore); odd tile
    # counts are handled by clamping the index_map and masking the overhang.
    ncores = 2 if n_tiles >= 2 else 1
    spc = -(-n_tiles // ncores)          # grid steps per core
    needs_mask = (rows % tile_rows != 0) or (spc * ncores != n_tiles)
    last_tile = n_tiles - 1

    kernel = functools.partial(
        _l1_sum_kernel, scale=scale, rows=rows, tile_rows=tile_rows,
        steps_per_core=spc, needs_mask=needs_mask, has_weight=has_weight)

    in_spec = pl.BlockSpec(
        (tile_rows, LANES),
        lambda c, i: (jnp.minimum(c * spc + i, last_tile), 0))

    partials = pl.pallas_call(
        kernel,
        out_shape=jax.ShapeDtypeStruct((ncores, 8, LANES), jnp.float32),
        grid_spec=pltpu.PrefetchScalarGridSpec(
            num_scalar_prefetch=0,
            grid=(ncores, spc),
            in_specs=[in_spec] * len(slabs),
            out_specs=pl.BlockSpec((1, 8, LANES), lambda c, i: (c, 0, 0)),
            scratch_shapes=[pltpu.VMEM((1, LANES), jnp.float32)],
        ),
        compiler_params=pltpu.CompilerParams(
            dimension_semantics=("parallel", "arbitrary"),
            vmem_limit_bytes=VMEM_LIMIT_BYTES),
    )(*slabs)

    total = jnp.sum(partials[:, 0, 0])   # combine (<= 2) per-core partials
    return total.astype(orig_dtype)


class L1LossPallas:
    """Pallas TPU equivalent of DLIENet L1Loss (forward pass)."""

    def __init__(self, loss_weight=1.0, reduction="mean"):
        if reduction not in ("none", "mean", "sum"):
            raise ValueError(f"Unsupported reduction mode: {reduction}.")
        self.loss_weight = float(loss_weight)
        self.reduction = reduction

    def __call__(self, pred, target, weight=None):
        has_weight = weight is not None
        if not has_weight:
            weight = pred  # dummy, DCE'd when has_weight=False
        return _l1_loss_impl(
            pred, target, weight,
            reduction=self.reduction,
            loss_weight=self.loss_weight,
            has_weight=has_weight,
        )


# ------------------------------ main ----------------------------------------

if __name__ == "__main__":
    key = jax.random.PRNGKey(0)
    k1, k2, k3 = jax.random.split(key, 3)

    N, C, H, W = 2, 4, 16, 16  # NCHW, as in the PyTorch module
    pred = jax.random.normal(k1, (N, C, H, W), dtype=jnp.float32)
    target = jax.random.normal(k2, (N, C, H, W), dtype=jnp.float32)
    weight = jax.random.uniform(k3, (N, C, H, W), dtype=jnp.float32)

    loss_fn = L1LossPallas(loss_weight=1.0, reduction="mean")

    # reduction='mean', no weight
    out_mean = loss_fn(pred, target)
    jax.block_until_ready(out_mean)
    ref_mean = jnp.mean(jnp.abs(pred - target))
    assert jnp.allclose(out_mean, ref_mean, rtol=1e-5, atol=1e-5)

    # reduction='mean', with elementwise weight
    out_w = loss_fn(pred, target, weight)
    jax.block_until_ready(out_w)
    ref_w = jnp.mean(jnp.abs(pred - target) * weight)
    assert jnp.allclose(out_w, ref_w, rtol=1e-5, atol=1e-5)

    # reduction='sum', loss_weight=0.5
    out_sum = L1LossPallas(loss_weight=0.5, reduction="sum")(pred, target)
    jax.block_until_ready(out_sum)
    ref_sum = 0.5 * jnp.sum(jnp.abs(pred - target))
    assert jnp.allclose(out_sum, ref_sum, rtol=1e-5, atol=1e-5)

    # reduction='none', loss_weight fused in-kernel
    out_none = L1LossPallas(loss_weight=2.0, reduction="none")(pred, target, weight)
    jax.block_until_ready(out_none)
    ref_none = 2.0 * jnp.abs(pred - target) * weight
    assert out_none.shape == (N, C, H, W)
    assert jnp.allclose(out_none, ref_none, rtol=1e-5, atol=1e-5)

    # multi-tile grid with ragged tail + 2-core split with an overhang step:
    # numel = 640000 -> rows = 5000, tile_rows = 2048, n_tiles = 3, ncores = 2
    kb1, kb2 = jax.random.split(k1)
    big_p = jax.random.normal(kb1, (5, 8, 125, 128), dtype=jnp.float32)
    big_t = jax.random.normal(kb2, (5, 8, 125, 128), dtype=jnp.float32)
    out_big = loss_fn(big_p, big_t)
    jax.block_until_ready(out_big)
    assert jnp.allclose(out_big, jnp.mean(jnp.abs(big_p - big_t)),
                        rtol=1e-5, atol=1e-5)

    # awkward (non-128-divisible) shape exercises the small pad fallback
    ka1, ka2 = jax.random.split(k2)
    odd_p = jax.random.normal(ka1, (2, 3, 17, 19), dtype=jnp.float32)
    odd_t = jax.random.normal(ka2, (2, 3, 17, 19), dtype=jnp.float32)
    out_odd = L1LossPallas(loss_weight=1.0, reduction="sum")(odd_p, odd_t)
    jax.block_until_ready(out_odd)
    assert jnp.allclose(out_odd, jnp.sum(jnp.abs(odd_p - odd_t)),
                        rtol=1e-5, atol=1e-5)

    print("KERNEL_OK")
</pallas_src>

<mosaic_0001>
module attributes {stable_mosaic.version = 11 : i64} {
  func.func @_l1_sum_kernel(%arg0: i32, %arg1: i32, %arg2: memref<16x128xf32, #tpu.memory_space<vmem>>, %arg3: memref<16x128xf32, #tpu.memory_space<vmem>>, %arg4: memref<1x8x128xf32, #tpu.memory_space<vmem>>, %arg5: memref<1x128xf32, #tpu.memory_space<vmem>>) attributes {dimension_semantics = [#tpu.dimension_semantics<parallel>, #tpu.dimension_semantics<arbitrary>], iteration_bounds = array<i64: 1, 1>, scalar_prefetch = 0 : i64, scratch_operands = 1 : i64, tpu.core_type = #tpu.core_type<tc>, window_params = [{transform_indices = @transform_0, window_bounds = array<i64: 16, 128>}, {transform_indices = @transform_1, window_bounds = array<i64: 16, 128>}, {transform_indices = @transform_2, window_bounds = array<i64: 1, 8, 128>}]} {
    %c0_i32 = arith.constant 0 : i32
    %0 = arith.cmpi eq, %arg1, %c0_i32 : i32
    %1 = arith.extui %0 : i1 to i32
    %c0_i32_0 = arith.constant 0 : i32
    %2 = arith.cmpi ne, %1, %c0_i32_0 : i32
    scf.if %2 {
      %cst_10 = arith.constant 0.000000e+00 : f32
      %15 = vector.broadcast %cst_10 : f32 to vector<1x128xf32>
      %c0_11 = arith.constant 0 : index
      %c0_12 = arith.constant 0 : index
      %16 = vector.load %arg5[%c0_11, %c0_12] : memref<1x128xf32, #tpu.memory_space<vmem>>, vector<1x128xf32>
      tpu.vector_store %arg5[%c0_11, %c0_12], %15 {strides = array<i32>} : memref<1x128xf32, #tpu.memory_space<vmem>>, vector<1x128xf32>,
    } else {
    }
    %c0 = arith.constant 0 : index
    %c0_1 = arith.constant 0 : index
    %3 = vector.load %arg2[%c0, %c0_1] : memref<16x128xf32, #tpu.memory_space<vmem>>, vector<16x128xf32>
    %c0_2 = arith.constant 0 : index
    %c0_3 = arith.constant 0 : index
    %4 = vector.load %arg3[%c0_2, %c0_3] : memref<16x128xf32, #tpu.memory_space<vmem>>, vector<16x128xf32>
    %5 = arith.subf %3, %4 : vector<16x128xf32>
    %6 = math.absf %5 : vector<16x128xf32>
    %c0_4 = arith.constant 0 : index
    %c0_5 = arith.constant 0 : index
    %7 = vector.load %arg5[%c0_4, %c0_5] : memref<1x128xf32, #tpu.memory_space<vmem>>, vector<1x128xf32>
    %cst = arith.constant dense<0.000000e+00> : vector<128xf32>
    %8 = vector.multi_reduction <add>, %6, %cst [0] : vector<16x128xf32> to vector<128xf32>
    %9 = vector.shape_cast %8 : vector<128xf32> to vector<1x128xf32>
    %10 = arith.addf %7, %9 : vector<1x128xf32>
    %c0_6 = arith.constant 0 : index
    %c0_7 = arith.constant 0 : index
    %11 = vector.load %arg5[%c0_6, %c0_7] : memref<1x128xf32, #tpu.memory_space<vmem>>, vector<1x128xf32>
    tpu.vector_store %arg5[%c0_6, %c0_7], %10 {strides = array<i32>} : memref<1x128xf32, #tpu.memory_space<vmem>>, vector<1x128xf32>,
    %c0_i32_8 = arith.constant 0 : i32
    %12 = arith.cmpi eq, %arg1, %c0_i32_8 : i32
    %13 = arith.extui %12 : i1 to i32
    %c0_i32_9 = arith.constant 0 : i32
    %14 = arith.cmpi ne, %13, %c0_i32_9 : i32
    scf.if %14 {
      %c0_10 = arith.constant 0 : index
      %c0_11 = arith.constant 0 : index
      %15 = vector.load %arg5[%c0_10, %c0_11] : memref<1x128xf32, #tpu.memory_space<vmem>>, vector<1x128xf32>
      %16 = vector.shape_cast %15 : vector<1x128xf32> to vector<1x1x128xf32>
      %cst_12 = arith.constant dense<0.000000e+00> : vector<1xf32>
      %17 = vector.multi_reduction <add>, %16, %cst_12 [1, 2] : vector<1x1x128xf32> to vector<1xf32>
      %18 = vector.shape_cast %17 : vector<1xf32> to vector<1x1x1xf32>
      %19 = vector.extract %18[0, 0, 0] : f32 from vector<1x1x1xf32>
      %cst_13 = arith.constant 4.8828125E-4 : f32
      %20 = arith.mulf %19, %cst_13 : f32
      %21 = vector.broadcast %20 : f32 to vector<1x8x128xf32>
      %c0_14 = arith.constant 0 : index
      %c0_15 = arith.constant 0 : index
      %c0_16 = arith.constant 0 : index
      %22 = vector.load %arg4[%c0_14, %c0_15, %c0_16] : memref<1x8x128xf32, #tpu.memory_space<vmem>>, vector<1x8x128xf32>
      tpu.vector_store %arg4[%c0_14, %c0_15, %c0_16], %21 {strides = array<i32>} : memref<1x8x128xf32, #tpu.memory_space<vmem>>, vector<1x8x128xf32>,
    } else {
    }
    return
  }
  func.func @transform_0(%arg0: i32, %arg1: i32) -> (i32, i32) {
    %c1_i32 = arith.constant 1 : i32
    %0 = arith.muli %arg0, %c1_i32 : i32
    %1 = arith.addi %0, %arg1 : i32
    %c0_i32 = arith.constant 0 : i32
    %2 = arith.minsi %1, %c0_i32 : i32
    %c0_i32_0 = arith.constant 0 : i32
    %c0_i32_1 = arith.constant 0 : i32
    return %2, %c0_i32_0 : i32, i32
  }
  func.func @transform_1(%arg0: i32, %arg1: i32) -> (i32, i32) {
    %c1_i32 = arith.constant 1 : i32
    %0 = arith.muli %arg0, %c1_i32 : i32
    %1 = arith.addi %0, %arg1 : i32
    %c0_i32 = arith.constant 0 : i32
    %2 = arith.minsi %1, %c0_i32 : i32
    %c0_i32_0 = arith.constant 0 : i32
    %c0_i32_1 = arith.constant 0 : i32
    return %2, %c0_i32_0 : i32, i32
  }
  func.func @transform_2(%arg0: i32, %arg1: i32) -> (i32, i32, i32) {
    %c0_i32 = arith.constant 0 : i32
    %c0_i32_0 = arith.constant 0 : i32
    %c0_i32_1 = arith.constant 0 : i32
    return %arg0, %c0_i32, %c0_i32_0 : i32, i32, i32
  }
}

</mosaic_0001>

<bundles_post_ra>
// kernel: _l1_loss_impl.1
= control target key start
LH: loop header
LB: loop body
LE: loop exit
PB: predicated region body
PF: predicated region fallthrough
CT: control target
= control target key end

     0   :  { %v135_v0 = vmov 0.0   ;;  %vm102_vm0 = vcmask 1040384   ;;  %s166_s0 = inlined_call_operand.vmem [shape: f32[16,128], index: 0, kind: input, shape index: {}]   ;;  %s167_s1 = inlined_call_operand.vmem [shape: f32[16,128], index: 1, kind: input, shape index: {}]   ;;  %s168_s2 = inlined_call_operand.vmem [shape: f32[1,8,128], index: 2, kind: output, shape index: {}]  }
   0x1   :  { %79 = vst [vmem:[#allocation2] sm:$0x1] %v135_v0  ;;  %v80_v1 = vld [vmem:[%s166_s0] sm:$0xff]  ;;  %v81_v2 = vld [vmem:[%s166_s0 + $0x8] sm:$0xff] }
   0x2   :  { %v82_v3 = vld [vmem:[%s167_s1] sm:$0xff]  ;;  %v83_v4 = vld [vmem:[%s167_s1 + $0x8] sm:$0xff] }
   0x3   :  { %v84_v5 = vsub.f32 %v80_v1, %v82_v3  ;;  %v85_v6 = vsub.f32 %v81_v2, %v83_v4 }
   0x5   :  { %v86_v7 = vand.u32 2147483647, %v84_v5  ;;  %v87_v8 = vand.u32 2147483647, %v85_v6 }
   0x7   :  { %v89_v9 = vadd.f32 %v87_v8, %v86_v7 }
   0x8   :  { %v88_v15 = vld [vmem:[#allocation2] sm:$0x1] }
   0x9   :  { %v90_v10 = vrot.slane %v89_v9, 4 }
   0xb   :  { %v91_v11 = vadd.f32 %v90_v10, %v89_v9 }
   0xd   :  { %v92_v12 = vrot.slane %v91_v11, 2 }
   0xf   :  { %v93_v13 = vadd.f32 %v92_v12, %v91_v11 }
  0x11   :  { %v94_v14 = vrot.slane %v93_v13, 1 }
  0x13   :  { %v95_v16 = vadd.f32 %v94_v14, %v93_v13 }
  0x15   :  { %v96_v17 = vadd.f32 %v95_v16, %v88_v15 }
  0x17   :  { %97 = vst [vmem:[#allocation2] sm:$0x1] %v96_v17 }
  0x1e   :  { %v101_v18 = vld [vmem:[#allocation2] sm:$0x1] }
  0x1f   :  { %v103_v19 = vsel %vm102_vm0, %v101_v18, 0.0 }
  0x20   :  { %104 = vadd.xlane.f32.xlu0 %v103_v19 }
  0xad   :  { %v105_v20 = vpop.xlane.xlu0 %104 }
  0xae   :  { %v106_v21 = vrot.slane %v105_v20, 4 }
  0xb0   :  { %v107_v22 = vadd.f32 %v106_v21, %v105_v20 }
  0xb2   :  { %v108_v23 = vrot.slane %v107_v22, 2 }
  0xb4   :  { %v109_v24 = vadd.f32 %v108_v23, %v107_v22 }
  0xb6   :  { %v110_v25 = vrot.slane %v109_v24, 1 }
  0xb8   :  { %v111_v26 = vadd.f32 %v110_v25, %v109_v24 }
  0xba   :  { %132 = vpush %v111_v26 }
  0xeb   :  { %s133_s0 = spop %132 }
  0xec   :  { %s113_s1 = smul.f32 0.00048828125, %s133_s0 }
  0xee   :  { %v114_v27 = vstv %s113_s1 }
  0xef   :  { %115 = vst [vmem:[%s168_s2] sm:$0xff] %v114_v27 }

</bundles_post_ra>
